<compile_context>
chip_gen: v7x
topology: tpu7x:2x2x1
jax: 0.10.0
libtpu: 0.0.40
codegen_flags: <defaults>
</compile_context>

<pallas_src>
import functools

import jax
import jax.numpy as jnp
from jax.experimental import pallas as pl
from jax.experimental.pallas import tpu as pltpu


# ---------------------------------------------------------------------------
# helpers
# ---------------------------------------------------------------------------
def _round_up(x, m):
    return (x + m - 1) // m * m


def _vmem_capacity_bytes():
    try:
        return int(pltpu.get_tpu_info().vmem_capacity_bytes)
    except Exception:
        return 64 * 1024 * 1024  # conservative (v7x-sized) fallback


def _choose_hw_tile(hw, bt, c, f_pad, x_bytes, budget, max_hw_tile=None):
    """Largest spatial tile whose per-step working set fits the VMEM budget."""
    cands = [hw] + [t for t in (4096, 2048, 1024, 512, 256, 128)
                    if t < hw and hw % t == 0]
    if max_hw_tile is not None:
        cands = [t for t in cands if t <= max_hw_tile] or [cands[-1]]
    for t in cands:
        # 2x double-buffered input block + f32 activation tile + acc/out
        work = 2 * bt * c * t * x_bytes + bt * f_pad * t * 4 + 2 * bt * f_pad * 4
        if work <= budget:
            return t
    return cands[-1]


# ---------------------------------------------------------------------------
# Kernel 1: backbone stand-in.
#   h[b, f, s] = relu(sum_c x[b, c, s] * wc[c, f] + bc[f])     (1x1 conv, VPU)
#   feat[b, f] = mean_s h[b, f, s]                             (global avg pool)
# Grid: (batch tiles [parallel], spatial tiles [arbitrary, reduction]).
# ---------------------------------------------------------------------------
def backbone_kernel(x_ref, wc_ref, bc_ref, feat_ref, acc_ref, *, inv_hw):
    k = pl.program_id(1)

    @pl.when(k == 0)
    def _init():
        acc_ref[...] = jnp.zeros_like(acc_ref)

    x = x_ref[...].astype(jnp.float32)          # (BT, C, HWT), upcast from bf16
    wc = wc_ref[...]                            # (C, F_pad, 1)
    bt, c_in, hwt = x.shape

    # 1x1 conv as VPU broadcast MACs; C is tiny so an MXU matmul (K=C) would
    # waste the systolic array.  Big tiles stay in their natural layout:
    # x slice (BT,1,HWT) broadcasts over sublanes, wc (F_pad,1) over lanes.
    h = x[:, 0:1, :] * wc[0][None, :, :]        # (BT, F_pad, HWT)
    for c in range(1, c_in):                    # static unroll, C known at trace
        h = h + x[:, c:c + 1, :] * wc[c][None, :, :]
    h = jnp.maximum(h + bc_ref[...][None, :, :], 0.0)

    # Partial global-average-pool: sum this spatial tile into the accumulator.
    acc_ref[...] += jnp.sum(h, axis=-1)         # (BT, F_pad), lane-dense

    @pl.when(k == pl.num_programs(1) - 1)
    def _finish():
        feat_ref[...] = acc_ref[...] * inv_hw


# ---------------------------------------------------------------------------
# Kernel 2: the CNNEncoder head (exact semantics of the PyTorch module):
#   z   = features @ W_lin + b_lin                      (nn.Linear)
#   out = gamma * (z - mean_B) / sqrt(var_B + 1e-5) + beta
#         (nn.BatchNorm1d, training mode -> biased batch statistics)
# Grid over 128-lane embedding tiles; BN stats are per-feature so this is exact.
# ---------------------------------------------------------------------------
def head_kernel(f_ref, wl_ref, bl_ref, gamma_ref, beta_ref, out_ref):
    z = jnp.dot(f_ref[...], wl_ref[...],
                preferred_element_type=jnp.float32,
                precision=jax.lax.Precision.HIGHEST)
    z = z + bl_ref[...]                                  # (B, TE)
    mu = jnp.mean(z, axis=0, keepdims=True)              # (1, TE)
    var = jnp.mean((z - mu) ** 2, axis=0, keepdims=True)  # biased, like BN train
    z_hat = (z - mu) * jax.lax.rsqrt(var + 1e-5)
    out_ref[...] = z_hat * gamma_ref[...] + beta_ref[...]


# ---------------------------------------------------------------------------
# wrapper
# ---------------------------------------------------------------------------
def cnn_encoder_forward(img, params, *, max_hw_tile=None):
    """img: (B, C_in, H, W) float32/bfloat16 NCHW -> (B, embedding_size) float32."""
    B, C, H, W = img.shape
    HW = H * W
    F = params["wc"].shape[1]
    E = params["wl"].shape[1]
    F_pad = _round_up(F, 128)
    E_pad = _round_up(E, 128)

    # Free, contiguous reshape — NO transpose, no extra HBM pass over the image.
    x = img.reshape(B, C, HW)

    # Tiny (parameter-sized) host-side prep: pad F / E to 128-lane multiples for
    # lane-dense stores, and lay the 1x1-conv weight/bias out as (C, F_pad, 1) /
    # (F_pad, 1) so the kernel broadcasts need no relayout of large tiles.
    # Zero padding is exact: padded features pool to 0 and padded embedding
    # columns normalize to 0 (gamma/beta padded with 0), then get sliced off.
    wc_sb = jnp.pad(params["wc"], ((0, 0), (0, F_pad - F)))[:, :, None]   # (C,F_pad,1)
    bc_sb = jnp.pad(params["bc"], ((0, 0), (0, F_pad - F)))[0][:, None]   # (F_pad,1)
    wl_p = jnp.pad(params["wl"], ((0, F_pad - F), (0, E_pad - E)))        # (F_pad,E_pad)
    bl_p = jnp.pad(params["bl"], ((0, 0), (0, E_pad - E)))                # (1,E_pad)
    gm_p = jnp.pad(params["gamma"], ((0, 0), (0, E_pad - E)))
    bt_p = jnp.pad(params["beta"], ((0, 0), (0, E_pad - E)))

    # Tile sizes from the device's VMEM capacity (v5e/v6e: 128 MiB, v7x: 64 MiB).
    vmem_cap = _vmem_capacity_bytes()
    vmem_limit = min(int(vmem_cap * 3 // 4), 96 * 1024 * 1024)
    BT = B  # batch is small; the spatial axis carries the VMEM pressure
    HWT = _choose_hw_tile(HW, BT, C, F_pad, jnp.dtype(x.dtype).itemsize,
                          vmem_limit // 2, max_hw_tile)
    n_hw = HW // HWT

    # --- backbone stand-in: batch tiles (parallel) x spatial reduction tiles ---
    feats = pl.pallas_call(
        functools.partial(backbone_kernel, inv_hw=float(1.0 / HW)),
        grid=(B // BT, n_hw),
        in_specs=[
            pl.BlockSpec((BT, C, HWT), lambda b, k: (b, 0, k)),
            pl.BlockSpec((C, F_pad, 1), lambda b, k: (0, 0, 0)),
            pl.BlockSpec((F_pad, 1), lambda b, k: (0, 0)),
        ],
        out_specs=pl.BlockSpec((BT, F_pad), lambda b, k: (b, 0)),
        out_shape=jax.ShapeDtypeStruct((B, F_pad), jnp.float32),
        scratch_shapes=[pltpu.VMEM((BT, F_pad), jnp.float32)],
        compiler_params=pltpu.CompilerParams(
            dimension_semantics=("parallel", "arbitrary"),
            vmem_limit_bytes=vmem_limit,
        ),
    )(x, wc_sb, bc_sb)

    # --- head: Linear + BatchNorm1d, tiled over 128-lane embedding tiles -------
    TE = 128
    out_pad = pl.pallas_call(
        head_kernel,
        grid=(E_pad // TE,),
        in_specs=[
            pl.BlockSpec((B, F_pad), lambda j: (0, 0)),
            pl.BlockSpec((F_pad, TE), lambda j: (0, j)),
            pl.BlockSpec((1, TE), lambda j: (0, j)),
            pl.BlockSpec((1, TE), lambda j: (0, j)),
            pl.BlockSpec((1, TE), lambda j: (0, j)),
        ],
        out_specs=pl.BlockSpec((B, TE), lambda j: (0, j)),
        out_shape=jax.ShapeDtypeStruct((B, E_pad), jnp.float32),
        compiler_params=pltpu.CompilerParams(
            dimension_semantics=("parallel",),
            vmem_limit_bytes=vmem_limit,
        ),
    )(feats, wl_p, bl_p, gm_p, bt_p)

    return out_pad[:, :E] if E_pad != E else out_pad


# ---------------------------------------------------------------------------
# pure-JAX reference (same math, same bf16 input quantization) for checking
# ---------------------------------------------------------------------------
def reference_forward(img, params):
    B, C, H, W = img.shape
    x = img.astype(jnp.float32).reshape(B, C, H * W)
    h = jnp.einsum("bcs,cf->bsf", x, params["wc"],
                   precision=jax.lax.Precision.HIGHEST)
    h = jnp.maximum(h + params["bc"], 0.0)
    feats = jnp.mean(h, axis=1)                           # (B, F)
    z = jnp.dot(feats, params["wl"],
                precision=jax.lax.Precision.HIGHEST) + params["bl"]
    mu = jnp.mean(z, axis=0, keepdims=True)
    var = jnp.mean((z - mu) ** 2, axis=0, keepdims=True)
    return (z - mu) * jax.lax.rsqrt(var + 1e-5) * params["gamma"] + params["beta"]


def init_params(key, c_in, feat_dim, embedding_size):
    k1, k2, k3 = jax.random.split(key, 3)
    return {
        # synthetic backbone stand-in (frozen, runs under no_grad in the original)
        "wc": 0.1 * jax.random.normal(k1, (c_in, feat_dim), jnp.float32),
        "bc": jnp.zeros((1, feat_dim), jnp.float32),
        # nn.Linear(resnet.fc.in_features -> embedding_size)
        "wl": 0.05 * jax.random.normal(k2, (feat_dim, embedding_size), jnp.float32),
        "bl": 0.01 * jax.random.normal(k3, (1, embedding_size), jnp.float32),
        # nn.BatchNorm1d(embedding_size): default affine init
        "gamma": jnp.ones((1, embedding_size), jnp.float32),
        "beta": jnp.zeros((1, embedding_size), jnp.float32),
    }


if __name__ == "__main__":
    B, C_IN, H, W = 2, 4, 16, 16      # small NCHW input
    FEAT_DIM = 64                     # stand-in for resnet.fc.in_features (2048)
    EMBEDDING_SIZE = 32

    key = jax.random.PRNGKey(0)
    k_img, k_par = jax.random.split(key)
    # Images delivered in bf16 (halves the dominant HBM stream into the backbone);
    # all accumulation, pooling and BN statistics are f32 inside the kernels.
    img = jax.random.normal(k_img, (B, C_IN, H, W), jnp.float32).astype(jnp.bfloat16)
    params = init_params(k_par, C_IN, FEAT_DIM, EMBEDDING_SIZE)

    # max_hw_tile=128 forces 2 spatial tiles so the HW-reduction/accumulator
    # path (the structure needed at real ResNet sizes) is exercised even here.
    out = cnn_encoder_forward(img, params, max_hw_tile=128)
    out = jax.block_until_ready(out)

    ref = reference_forward(img, params)
    assert out.shape == (B, EMBEDDING_SIZE), out.shape
    assert jnp.allclose(out, ref, rtol=1e-3, atol=1e-3), \
        float(jnp.max(jnp.abs(out - ref)))

    print("KERNEL_OK")
</pallas_src>

<mosaic_0001>
module attributes {stable_mosaic.version = 11 : i64} {
  func.func @backbone_kernel(%arg0: i32, %arg1: i32, %arg2: memref<2x4x128xbf16, #tpu.memory_space<vmem>>, %arg3: memref<4x128x1xf32, #tpu.memory_space<vmem>>, %arg4: memref<128x1xf32, #tpu.memory_space<vmem>>, %arg5: memref<2x128xf32, #tpu.memory_space<vmem>>, %arg6: memref<2x128xf32, #tpu.memory_space<vmem>>) attributes {dimension_semantics = [#tpu.dimension_semantics<parallel>, #tpu.dimension_semantics<arbitrary>], iteration_bounds = array<i64: 1, 2>, scalar_prefetch = 0 : i64, scratch_operands = 1 : i64, tpu.core_type = #tpu.core_type<tc>, window_params = [{transform_indices = @transform_0, window_bounds = array<i64: 2, 4, 128>}, {pipeline_mode = #tpu.pipeline_mode<synchronous>, transform_indices = @transform_1, window_bounds = array<i64: 4, 128, 1>}, {pipeline_mode = #tpu.pipeline_mode<synchronous>, transform_indices = @transform_2, window_bounds = array<i64: 128, 1>}, {transform_indices = @transform_3, window_bounds = array<i64: 2, 128>}]} {
    %c0_i32 = arith.constant 0 : i32
    %0 = arith.cmpi eq, %arg1, %c0_i32 : i32
    %1 = arith.extui %0 : i1 to i32
    %c0_i32_0 = arith.constant 0 : i32
    %2 = arith.cmpi ne, %1, %c0_i32_0 : i32
    scf.if %2 {
      %cst_14 = arith.constant 0.000000e+00 : f32
      %50 = vector.broadcast %cst_14 : f32 to vector<2x128xf32>
      %c0_15 = arith.constant 0 : index
      %c0_16 = arith.constant 0 : index
      %51 = vector.load %arg6[%c0_15, %c0_16] : memref<2x128xf32, #tpu.memory_space<vmem>>, vector<2x128xf32>
      tpu.vector_store %arg6[%c0_15, %c0_16], %50 {strides = array<i32>} : memref<2x128xf32, #tpu.memory_space<vmem>>, vector<2x128xf32>,
    } else {
    }
    %c0 = arith.constant 0 : index
    %c0_1 = arith.constant 0 : index
    %c0_2 = arith.constant 0 : index
    %3 = vector.load %arg2[%c0, %c0_1, %c0_2] : memref<2x4x128xbf16, #tpu.memory_space<vmem>>, vector<2x4x128xbf16>
    %4 = arith.extf %3 : vector<2x4x128xbf16> to vector<2x4x128xf32>
    %c0_3 = arith.constant 0 : index
    %c0_4 = arith.constant 0 : index
    %c0_5 = arith.constant 0 : index
    %5 = vector.load %arg3[%c0_3, %c0_4, %c0_5] : memref<4x128x1xf32, #tpu.memory_space<vmem>>, vector<4x128x1xf32>
    %6 = vector.extract_strided_slice %4 {offsets = [0, 0, 0], sizes = [2, 1, 128], strides = [1, 1, 1]} : vector<2x4x128xf32> to vector<2x1x128xf32>
    %7 = vector.extract_strided_slice %5 {offsets = [0, 0, 0], sizes = [1, 128, 1], strides = [1, 1, 1]} : vector<4x128x1xf32> to vector<1x128x1xf32>
    %8 = vector.shape_cast %7 : vector<1x128x1xf32> to vector<128x1xf32>
    %9 = vector.shape_cast %8 : vector<128x1xf32> to vector<1x128x1xf32>
    %10 = vector.broadcast %6 : vector<2x1x128xf32> to vector<2x128x128xf32>
    %11 = vector.broadcast %9 : vector<1x128x1xf32> to vector<2x128x128xf32>
    %12 = arith.mulf %10, %11 : vector<2x128x128xf32>
    %13 = vector.extract_strided_slice %4 {offsets = [0, 1, 0], sizes = [2, 1, 128], strides = [1, 1, 1]} : vector<2x4x128xf32> to vector<2x1x128xf32>
    %14 = vector.extract_strided_slice %5 {offsets = [1, 0, 0], sizes = [1, 128, 1], strides = [1, 1, 1]} : vector<4x128x1xf32> to vector<1x128x1xf32>
    %15 = vector.shape_cast %14 : vector<1x128x1xf32> to vector<128x1xf32>
    %16 = vector.shape_cast %15 : vector<128x1xf32> to vector<1x128x1xf32>
    %17 = vector.broadcast %13 : vector<2x1x128xf32> to vector<2x128x128xf32>
    %18 = vector.broadcast %16 : vector<1x128x1xf32> to vector<2x128x128xf32>
    %19 = arith.mulf %17, %18 : vector<2x128x128xf32>
    %20 = arith.addf %12, %19 : vector<2x128x128xf32>
    %21 = vector.extract_strided_slice %4 {offsets = [0, 2, 0], sizes = [2, 1, 128], strides = [1, 1, 1]} : vector<2x4x128xf32> to vector<2x1x128xf32>
    %22 = vector.extract_strided_slice %5 {offsets = [2, 0, 0], sizes = [1, 128, 1], strides = [1, 1, 1]} : vector<4x128x1xf32> to vector<1x128x1xf32>
    %23 = vector.shape_cast %22 : vector<1x128x1xf32> to vector<128x1xf32>
    %24 = vector.shape_cast %23 : vector<128x1xf32> to vector<1x128x1xf32>
    %25 = vector.broadcast %21 : vector<2x1x128xf32> to vector<2x128x128xf32>
    %26 = vector.broadcast %24 : vector<1x128x1xf32> to vector<2x128x128xf32>
    %27 = arith.mulf %25, %26 : vector<2x128x128xf32>
    %28 = arith.addf %20, %27 : vector<2x128x128xf32>
    %29 = vector.extract_strided_slice %4 {offsets = [0, 3, 0], sizes = [2, 1, 128], strides = [1, 1, 1]} : vector<2x4x128xf32> to vector<2x1x128xf32>
    %30 = vector.extract_strided_slice %5 {offsets = [3, 0, 0], sizes = [1, 128, 1], strides = [1, 1, 1]} : vector<4x128x1xf32> to vector<1x128x1xf32>
    %31 = vector.shape_cast %30 : vector<1x128x1xf32> to vector<128x1xf32>
    %32 = vector.shape_cast %31 : vector<128x1xf32> to vector<1x128x1xf32>
    %33 = vector.broadcast %29 : vector<2x1x128xf32> to vector<2x128x128xf32>
    %34 = vector.broadcast %32 : vector<1x128x1xf32> to vector<2x128x128xf32>
    %35 = arith.mulf %33, %34 : vector<2x128x128xf32>
    %36 = arith.addf %28, %35 : vector<2x128x128xf32>
    %c0_6 = arith.constant 0 : index
    %c0_7 = arith.constant 0 : index
    %37 = vector.load %arg4[%c0_6, %c0_7] : memref<128x1xf32, #tpu.memory_space<vmem>>, vector<128x1xf32>
    %38 = vector.shape_cast %37 : vector<128x1xf32> to vector<1x128x1xf32>
    %39 = vector.broadcast %38 : vector<1x128x1xf32> to vector<2x128x128xf32>
    %40 = arith.addf %36, %39 : vector<2x128x128xf32>
    %cst = arith.constant 0.000000e+00 : f32
    %41 = vector.broadcast %cst : f32 to vector<2x128x128xf32>
    %42 = arith.maximumf %40, %41 : vector<2x128x128xf32>
    %c0_8 = arith.constant 0 : index
    %c0_9 = arith.constant 0 : index
    %43 = vector.load %arg6[%c0_8, %c0_9] : memref<2x128xf32, #tpu.memory_space<vmem>>, vector<2x128xf32>
    %cst_10 = arith.constant dense<0.000000e+00> : vector<2x128xf32>
    %44 = vector.multi_reduction <add>, %42, %cst_10 [2] : vector<2x128x128xf32> to vector<2x128xf32>
    %45 = arith.addf %43, %44 : vector<2x128xf32>
    %c0_11 = arith.constant 0 : index
    %c0_12 = arith.constant 0 : index
    %46 = vector.load %arg6[%c0_11, %c0_12] : memref<2x128xf32, #tpu.memory_space<vmem>>, vector<2x128xf32>
    tpu.vector_store %arg6[%c0_11, %c0_12], %45 {strides = array<i32>} : memref<2x128xf32, #tpu.memory_space<vmem>>, vector<2x128xf32>,
    %c1_i32 = arith.constant 1 : i32
    %47 = arith.cmpi eq, %arg1, %c1_i32 : i32
    %48 = arith.extui %47 : i1 to i32
    %c0_i32_13 = arith.constant 0 : i32
    %49 = arith.cmpi ne, %48, %c0_i32_13 : i32
    scf.if %49 {
      %c0_14 = arith.constant 0 : index
      %c0_15 = arith.constant 0 : index
      %50 = vector.load %arg6[%c0_14, %c0_15] : memref<2x128xf32, #tpu.memory_space<vmem>>, vector<2x128xf32>
      %cst_16 = arith.constant 3.906250e-03 : f32
      %51 = vector.broadcast %cst_16 : f32 to vector<2x128xf32>
      %52 = arith.mulf %50, %51 : vector<2x128xf32>
      %c0_17 = arith.constant 0 : index
      %c0_18 = arith.constant 0 : index
      %53 = vector.load %arg5[%c0_17, %c0_18] : memref<2x128xf32, #tpu.memory_space<vmem>>, vector<2x128xf32>
      tpu.vector_store %arg5[%c0_17, %c0_18], %52 {strides = array<i32>} : memref<2x128xf32, #tpu.memory_space<vmem>>, vector<2x128xf32>,
    } else {
    }
    return
  }
  func.func @transform_0(%arg0: i32, %arg1: i32) -> (i32, i32, i32) {
    %c0_i32 = arith.constant 0 : i32
    %c0_i32_0 = arith.constant 0 : i32
    return %arg0, %c0_i32, %arg1 : i32, i32, i32
  }
  func.func @transform_1(%arg0: i32, %arg1: i32) -> (i32, i32, i32) {
    %c0_i32 = arith.constant 0 : i32
    %c0_i32_0 = arith.constant 0 : i32
    %c0_i32_1 = arith.constant 0 : i32
    %c0_i32_2 = arith.constant 0 : i32
    return %c0_i32, %c0_i32_0, %c0_i32_1 : i32, i32, i32
  }
  func.func @transform_2(%arg0: i32, %arg1: i32) -> (i32, i32) {
    %c0_i32 = arith.constant 0 : i32
    %c0_i32_0 = arith.constant 0 : i32
    %c0_i32_1 = arith.constant 0 : i32
    return %c0_i32, %c0_i32_0 : i32, i32
  }
  func.func @transform_3(%arg0: i32, %arg1: i32) -> (i32, i32) {
    %c0_i32 = arith.constant 0 : i32
    %c0_i32_0 = arith.constant 0 : i32
    return %arg0, %c0_i32 : i32, i32
  }
}

</mosaic_0001>

<bundles_post_ra>
// kernel: tpu_custom_call.1
= control target key start
LH: loop header
LB: loop body
LE: loop exit
PB: predicated region body
PF: predicated region fallthrough
CT: control target
= control target key end

     0   :  { %8 = vsyncpa [#allocation5], 0  ;;  %s1549_s12 = smov 0   ;;  %s1551_s13 = smov 0   ;;  %s2473_s0 = inlined_call_operand.vmem [shape: bf16[2,4,256], index: 0, kind: input, shape index: {}]   ;;  %s2474_s1 = inlined_call_operand.vmem [shape: f32[4,128,1], index: 1, kind: input, shape index: {}]   ;;  %s2475_s2 = inlined_call_operand.vmem [shape: f32[128,1], index: 2, kind: input, shape index: {}]   ;;  %s2476_s3 = inlined_call_operand.hbm [shape: f32[2,128], index: 3, kind: output, shape index: {}]  }
   0x1   :  { %s1553_s14 = smov 0   ;;  %s1555_s15 = smov 0  }
   0x2   :  { %s1557_s16 = smov 0  }
   0x3 LB: > { %s1392_s17 = sadd.s32 4294967295, %s1524_s16   ;;  %s23_s18 = sadd.s32 1, %s1520_s15  ;;  %s1524_s16 = sphi %s1557_s16, %s14_s16   ;;  %s1520_s15 = sphi %s1555_s15, %s2540_s15   ;;  %s1516_s14 = sphi %s1553_s14, %s2539_s14   ;;  %s1512_s13 = sphi %s1551_s13, %s2538_s13   ;;  %s1508_s12 = sphi %s1549_s12, %s2537_s12  }
   0x4   : > { %p24_p0 = scmp.ge.s32.totalorder %s23_s18, 2  ;;  %p42_p1 = scmp.ne.s32.totalorder %s1512_s13, %s1508_s12 }
   0x5   : > { %p43_p2 = scmp.eq.s32.totalorder %s1524_s16, 0  ;;  %s35_s20 = sadd.s32 1, %s1512_s13 }
   0x6   : > { %s2542_s18 = smov (%p24_p0, %s23_s18), 0  ;;  %p1394_p5 = scmp.ge.s32.totalorder %s1524_s16, 2 }
   0x7   : > { %p44_p3 = por %p43_p2, %p42_p1  ;;  %s31_s19 = ssub.s32 %s1520_s15, %s2542_s18 }
   0x8   : > { %p33_p4 = scmp.eq.s32.totalorder %s31_s19, 0  ;;  %142 = sbr.rel (%p1394_p5) target bundleno = 22 (0x16), region = 24 }
   0xa   : > { %s1585_s21 = scalar_select %p33_p4, %s1512_s13, %s35_s20  }
   0xf   : > { %145 = sbr.rel (!%p44_p3) target bundleno = 22 (0x16), region = 28  ;;  %s147_s22 = sand.u32 (%p44_p3), 1, %s1512_s13  }
  0x10   : > { %s1396_s23 = sshll.u32 (%p44_p3), %s1520_s15, 1  ;;  %s1395_s24 = sshll.u32 (%p44_p3), %s147_s22, 2 }
  0x11   : > { %s154_s27 = scalar_lea.vmem (%p44_p3), %s2473_s0, %s1396_s23  ;;  %s149_s28 = scalar_lea.vmem (%p44_p3), [#allocation3], %s1395_s24 }
  0x12   : > { %v170_v0 = vld [vmem:[%s154_s27] sm:$0x3] (%p44_p3)  ;;  %v172_v1 = vld [vmem:[%s154_s27 + $0x4] sm:$0x3] (%p44_p3) }
  0x13   : > { %171 = vst [vmem:[%s149_s28] sm:$0x3] (%p44_p3), %v170_v0  ;;  %173 = vst [vmem:[%s149_s28 + $0x2] sm:$0x3] (%p44_p3), %v172_v1 }
  0x16 PF: > { %p1397_p6 = scmp.ge.s32.totalorder %s1524_s16, 1  ;;  %p191_p7 = scmp.lt.s32.totalorder %s1524_s16, 3 }
  0x18   : > { %p192_p8 = pnand %p1397_p6, %p191_p7 }
  0x1a   : > { %195 = sbr.rel (%p192_p8) target bundleno = 544 (0x220), region = 62 }
  0x21   : > { %s198_s29 = sand.u32 1, %s1508_s12   ;;  %p1399_p9 = scmp.ne.s32.totalorder %s1516_s14, 0 }
  0x22   : > { %s1596_s30 = sshll.u32 %s198_s29, 2  ;;  %v1526_v2 = vmov (!%p1399_p9), 0.0  }
  0x23   : > { %s200_s4 = scalar_lea.vmem [#allocation3], %s1596_s30  ;;  %220 = sbr.rel (%p1399_p9) target bundleno = 42 (0x2a), region = 70  ;;  %221 = vst [vmem:[#allocation2] sm:$0x3] (!%p1399_p9), %v1526_v2 }
  0x2a PF: > { %v228_v3 = vld [vmem:[%s2474_s1 + $0x10] sm:$0xff]  ;;  %v226_v4 = vld [vmem:[%s2474_s1] sm:$0xff]  ;;  %v1527_v5 = vmov 0   ;;  %v229_v6 = vld [vmem:[%s2474_s1 + $0x18] sm:$0xff]  ;;  %vm1134_vm0 = vcmask 130112   ;;  %vm1141_vm1 = vcmask 195712  }
  0x2b   : > { %1455 = vset.pattern.permute.xlu1 %v1527_v5  ;;  %1454 = vset.pattern.permute.xlu0 %v1527_v5  ;;  %v227_v7 = vld [vmem:[%s2474_s1 + $0x8] sm:$0xff]  ;;  %v230_v9 = vld [vmem:[%s2474_s1 + $0x20] sm:$0xff]  ;;  %v233_v10 = vld [vmem:[%s2474_s1 + $0x38] sm:$0xff]  ;;  %vm1148_vm2 = vcmask 261312   ;;  %vm1155_vm3 = vcmask 326912   ;;  %vm1162_vm4 = vcmask 392512  }
  0x2c   : > { %310 = vperm.xlu1 %1455, %v228_v3   ;;  %300 = vperm.xlu0 %1454, %v226_v4   ;;  %v231_v8 = vld [vmem:[%s2474_s1 + $0x28] sm:$0xff]  ;;  %v232_v11 = vld [vmem:[%s2474_s1 + $0x30] sm:$0xff]  ;;  %v234_v13 = vld [vmem:[%s2474_s1 + $0x40] sm:$0xff]  ;;  %vm1169_vm5 = vcmask 458112   ;;  %vm1176_vm6 = vcmask 523712   ;;  %vm1183_vm7 = vcmask 589312  }
  0x2d   : > { %v235_v12 = vld [vmem:[%s2474_s1 + $0x48] sm:$0xff]  ;;  %v237_v14 = vld [vmem:[%s2474_s1 + $0x58] sm:$0xff]  ;;  %v236_v15 = vld [vmem:[%s2474_s1 + $0x50] sm:$0xff]  ;;  %vm1190_vm8 = vcmask 654912   ;;  %vm1197_vm9 = vcmask 720512   ;;  %vm1204_vm10 = vcmask 786112  }
  0x2e   : > { %v239_v16 = vld [vmem:[%s2474_s1 + $0x68] sm:$0xff]  ;;  %v238_v17 = vld [vmem:[%s2474_s1 + $0x60] sm:$0xff]  ;;  %v241_v18 = vld [vmem:[%s2474_s1 + $0x78] sm:$0xff]  ;;  %vm1211_vm11 = vcmask 851712   ;;  %vm1218_vm12 = vcmask 917312   ;;  %vm1225_vm13 = vcmask 982912  }
  0x2f   : > { %v240_v19 = vld [vmem:[%s2474_s1 + $0x70] sm:$0xff]  ;;  %v243_v20 = vld [vmem:[%s2474_s1 + $0x88] sm:$0xff]  ;;  %v242_v21 = vld [vmem:[%s2474_s1 + $0x80] sm:$0xff]  ;;  %vm1232_vm14 = vcmask 1048512   ;;  %vm1313_vm15 = vcmask 1041409   ;;  %p1400_p10 = scmp.ne.s32.totalorder %s1516_s14, 1 }
  0x30   : > { %315 = vperm.xlu1 %1455, %v229_v6   ;;  %305 = vperm.xlu0 %1454, %v227_v7   ;;  %v245_v22 = vld [vmem:[%s2474_s1 + $0x98] sm:$0xff]  ;;  %v244_v23 = vld [vmem:[%s2474_s1 + $0x90] sm:$0xff]  ;;  %v247_v24 = vld [vmem:[%s2474_s1 + $0xa8] sm:$0xff] }
  0x31   : > { %v246_v25 = vld [vmem:[%s2474_s1 + $0xa0] sm:$0xff]  ;;  %v249_v26 = vld [vmem:[%s2474_s1 + $0xb8] sm:$0xff]  ;;  %v248_v27 = vld [vmem:[%s2474_s1 + $0xb0] sm:$0xff] }
  0x32   : > { %v251_v28 = vld [vmem:[%s2474_s1 + $0xc8] sm:$0xff]  ;;  %v250_v29 = vld [vmem:[%s2474_s1 + $0xc0] sm:$0xff]  ;;  %v253_v30 = vld [vmem:[%s2474_s1 + $0xd8] sm:$0xff] }
  0x33   : > { %v252_v31 = vld [vmem:[%s2474_s1 + $0xd0] sm:$0xff]  ;;  %v255_v32 = vld [vmem:[%s2474_s1 + $0xe8] sm:$0xff]  ;;  %v254_v33 = vld [vmem:[%s2474_s1 + $0xe0] sm:$0xff] }
  0x34   : > { %325 = vperm.xlu1 %1455, %v231_v8   ;;  %320 = vperm.xlu0 %1454, %v230_v9   ;;  %v257_v34 = vld [vmem:[%s2474_s1 + $0xf8] sm:$0xff]  ;;  %v256_v35 = vld [vmem:[%s2474_s1 + $0xf0] sm:$0xff]  ;;  %v259_v36 = vld [vmem:[%s2474_s1 + $0x108] sm:$0xff] }
  0x35   : > { %v258_v37 = vld [vmem:[%s2474_s1 + $0x100] sm:$0xff]  ;;  %v261_v38 = vld [vmem:[%s2474_s1 + $0x118] sm:$0xff]  ;;  %v260_v39 = vld [vmem:[%s2474_s1 + $0x110] sm:$0xff] }
  0x36   : > { %v263_v40 = vld [vmem:[%s2474_s1 + $0x128] sm:$0xff]  ;;  %v262_v41 = vld [vmem:[%s2474_s1 + $0x120] sm:$0xff]  ;;  %v265_v42 = vld [vmem:[%s2474_s1 + $0x138] sm:$0xff] }
  0x37   : > { %v264_v43 = vld [vmem:[%s2474_s1 + $0x130] sm:$0xff]  ;;  %v267_v44 = vld [vmem:[%s2474_s1 + $0x148] sm:$0xff]  ;;  %v266_v45 = vld [vmem:[%s2474_s1 + $0x140] sm:$0xff] }
  0x38   : > { %335 = vperm.xlu1 %1455, %v233_v10   ;;  %330 = vperm.xlu0 %1454, %v232_v11   ;;  %v269_v46 = vld [vmem:[%s2474_s1 + $0x158] sm:$0xff]  ;;  %v268_v47 = vld [vmem:[%s2474_s1 + $0x150] sm:$0xff]  ;;  %v271_v48 = vld [vmem:[%s2474_s1 + $0x168] sm:$0xff] }
  0x39   : > { %v270_v49 = vld [vmem:[%s2474_s1 + $0x160] sm:$0xff]  ;;  %v273_v50 = vld [vmem:[%s2474_s1 + $0x178] sm:$0xff]  ;;  %v272_v51 = vld [vmem:[%s2474_s1 + $0x170] sm:$0xff] }
  0x3a   : > { %v275_v52 = vld [vmem:[%s2474_s1 + $0x188] sm:$0xff]  ;;  %v274_v53 = vld [vmem:[%s2474_s1 + $0x180] sm:$0xff]  ;;  %v277_v54 = vld [vmem:[%s2474_s1 + $0x198] sm:$0xff] }
  0x3b   : > { %v276_v55 = vld [vmem:[%s2474_s1 + $0x190] sm:$0xff]  ;;  %v279_v56 = vld [vmem:[%s2474_s1 + $0x1a8] sm:$0xff]  ;;  %v278_v57 = vld [vmem:[%s2474_s1 + $0x1a0] sm:$0xff] }
  0x3c   : > { %345 = vperm.xlu1 %1455, %v235_v12   ;;  %340 = vperm.xlu0 %1454, %v234_v13   ;;  %v281_v58 = vld [vmem:[%s2474_s1 + $0x1b8] sm:$0xff]  ;;  %v280_v59 = vld [vmem:[%s2474_s1 + $0x1b0] sm:$0xff]  ;;  %v283_v60 = vld [vmem:[%s2474_s1 + $0x1c8] sm:$0xff] }
  0x3d   : > { %v282_v61 = vld [vmem:[%s2474_s1 + $0x1c0] sm:$0xff]  ;;  %v285_v62 = vld [vmem:[%s2474_s1 + $0x1d8] sm:$0xff]  ;;  %v284_v63 = vld [vmem:[%s2474_s1 + $0x1d0] sm:$0xff] }
  0x3e   : > { %v867_v0 = vld [vmem:[%s2475_s2 + $0x8] sm:$0xff]  ;;  %v866_v1 = vld [vmem:[%s2475_s2] sm:$0xff]  ;;  %v869_v2 = vld [vmem:[%s2475_s2 + $0x18] sm:$0xff] }
  0x3f   : > { %v868_v3 = vld [vmem:[%s2475_s2 + $0x10] sm:$0xff]  ;;  %v871_v4 = vld [vmem:[%s2475_s2 + $0x28] sm:$0xff]  ;;  %v870_v5 = vld [vmem:[%s2475_s2 + $0x20] sm:$0xff] }
  0x40   : > { %355 = vperm.xlu1 %1455, %v237_v14   ;;  %350 = vperm.xlu0 %1454, %v236_v15   ;;  %v873_v8 = vld [vmem:[%s2475_s2 + $0x38] sm:$0xff]  ;;  %v872_v9 = vld [vmem:[%s2475_s2 + $0x30] sm:$0xff]  ;;  %v874_v12 = vld [vmem:[%s2475_s2 + $0x40] sm:$0xff] }
  0x41   : > { %v286_v13 = vld [vmem:[%s2474_s1 + $0x1e0] sm:$0xff] }
  0x44   : > { %365 = vperm.xlu1 %1455, %v239_v16   ;;  %360 = vperm.xlu0 %1454, %v238_v17   ;;  %v875_v16 = vld [vmem:[%s2475_s2 + $0x48] sm:$0xff] }
  0x45   : > { %v287_v17 = vld [vmem:[%s2474_s1 + $0x1e8] sm:$0xff] }
  0x48   : > { %375 = vperm.xlu1 %1455, %v241_v18   ;;  %370 = vperm.xlu0 %1454, %v240_v19  }
  0x4c   : > { %425 = vperm.xlu1 %1455, %v243_v20   ;;  %420 = vperm.xlu0 %1454, %v242_v21   ;;  %v876_v20 = vld [vmem:[%s2475_s2 + $0x50] sm:$0xff] }
  0x4d   : > { %v288_v21 = vld [vmem:[%s2474_s1 + $0x1f0] sm:$0xff] }
  0x50   : > { %435 = vperm.xlu1 %1455, %v245_v22   ;;  %430 = vperm.xlu0 %1454, %v244_v23  }
  0x54   : > { %445 = vperm.xlu1 %1455, %v247_v24   ;;  %440 = vperm.xlu0 %1454, %v246_v25   ;;  %v877_v24 = vld [vmem:[%s2475_s2 + $0x58] sm:$0xff] }
  0x55   : > { %v289_v25 = vld [vmem:[%s2474_s1 + $0x1f8] sm:$0xff] }
  0x58   : > { %455 = vperm.xlu1 %1455, %v249_v26   ;;  %450 = vperm.xlu0 %1454, %v248_v27  }
  0x5c   : > { %465 = vperm.xlu1 %1455, %v251_v28   ;;  %460 = vperm.xlu0 %1454, %v250_v29   ;;  %v879_v28 = vld [vmem:[%s2475_s2 + $0x68] sm:$0xff]  ;;  %v878_v29 = vld [vmem:[%s2475_s2 + $0x60] sm:$0xff] }
  0x60   : > { %475 = vperm.xlu1 %1455, %v253_v30   ;;  %470 = vperm.xlu0 %1454, %v252_v31  }
  0x64   : > { %485 = vperm.xlu1 %1455, %v255_v32   ;;  %480 = vperm.xlu0 %1454, %v254_v33   ;;  %v881_v32 = vld [vmem:[%s2475_s2 + $0x78] sm:$0xff]  ;;  %v880_v33 = vld [vmem:[%s2475_s2 + $0x70] sm:$0xff] }
  0x68   : > { %495 = vperm.xlu1 %1455, %v257_v34   ;;  %490 = vperm.xlu0 %1454, %v256_v35  }
  0x6c   : > { %577 = vperm.xlu1 %1455, %v259_v36   ;;  %572 = vperm.xlu0 %1454, %v258_v37  }
  0x70   : > { %587 = vperm.xlu1 %1455, %v261_v38   ;;  %582 = vperm.xlu0 %1454, %v260_v39  }
  0x74   : > { %597 = vperm.xlu1 %1455, %v263_v40   ;;  %592 = vperm.xlu0 %1454, %v262_v41  }
  0x78   : > { %607 = vperm.xlu1 %1455, %v265_v42   ;;  %602 = vperm.xlu0 %1454, %v264_v43   ;;  %v2477_v42 = vlaneseq }
  0x7c   : > { %617 = vperm.xlu1 %1455, %v267_v44   ;;  %612 = vperm.xlu0 %1454, %v266_v45   ;;  %v1885_v45 = vshrl.u32 %v2477_v42, 7 }
  0x7e   : > { %2491 = vst [vmem:[#allocation11_spill] sm:$0xff] %v1885_v45 }
  0x80   : > { %627 = vperm.xlu1 %1455, %v269_v46   ;;  %622 = vperm.xlu0 %1454, %v268_v47   ;;  %v222_v46 = vld [vmem:[%s200_s4] sm:$0x3]  ;;  %v223_v47 = vld [vmem:[%s200_s4 + $0x2] sm:$0x3] }
  0x84   : > { %637 = vperm.xlu1 %1455, %v271_v48   ;;  %632 = vperm.xlu0 %1454, %v270_v49  }
  0x88   : > { %647 = vperm.xlu1 %1455, %v273_v50   ;;  %642 = vperm.xlu0 %1454, %v272_v51   ;;  %v292_v50 = vsub.s32 0, %v1885_v45  ;;  %v1894_v51 = vunpack.c.l.bf16 %v222_v46 }
  0x8c   : > { %729 = vperm.xlu1 %1455, %v275_v52   ;;  %724 = vperm.xlu0 %1454, %v274_v53   ;;  %v1896_v52 = vunpack.c.l.bf16 %v223_v47  ;;  %v412_v53 = vsub.s32 1, %v1885_v45 }
  0x90   : > { %739 = vperm.xlu1 %1455, %v277_v54   ;;  %734 = vperm.xlu0 %1454, %v276_v55  }
  0x94   : > { %749 = vperm.xlu1 %1455, %v279_v56   ;;  %744 = vperm.xlu0 %1454, %v278_v57   ;;  %v1900_v56 = vrot.slane %v1894_v51, %v292_v50  ;;  %v1903_v57 = vrot.slane %v1896_v52, %v292_v50 }
  0x98   : > { %759 = vperm.xlu1 %1455, %v281_v58   ;;  %754 = vperm.xlu0 %1454, %v280_v59   ;;  %v1906_v58 = vrot.slane %v1894_v51, %v412_v53  ;;  %v1909_v59 = vrot.slane %v1896_v52, %v412_v53 }
  0x9c   : > { %769 = vperm.xlu1 %1455, %v283_v60   ;;  %764 = vperm.xlu0 %1454, %v282_v61  }
  0xa0   : > { %779 = vperm.xlu1 %1455, %v285_v62   ;;  %774 = vperm.xlu0 %1454, %v284_v63  }
  0xa4   : > { %889 = vperm.xlu1 %1455, %v867_v0   ;;  %884 = vperm.xlu0 %1454, %v866_v1  }
  0xa8   : > { %899 = vperm.xlu1 %1455, %v869_v2   ;;  %894 = vperm.xlu0 %1454, %v868_v3  }
  0xab   : > { %v1798_v6 = vpop.permute.xlu1 %310  ;;  %v1800_v7 = vpop.permute.xlu0 %300 }
  0xac   : > { %909 = vperm.xlu1 %1455, %v871_v4   ;;  %904 = vperm.xlu0 %1454, %v870_v5  }
  0xaf   : > { %v1808_v10 = vpop.permute.xlu1 %315  ;;  %v1810_v11 = vpop.permute.xlu0 %305 }
  0xb0   : > { %919 = vperm.xlu1 %1455, %v873_v8   ;;  %914 = vperm.xlu0 %1454, %v872_v9  }
  0xb3   : > { %v1818_v14 = vpop.permute.xlu1 %325  ;;  %v1820_v15 = vpop.permute.xlu0 %320 }
  0xb4   : > { %924 = vperm.xlu1 %1455, %v874_v12   ;;  %784 = vperm.xlu0 %1454, %v286_v13  }
  0xb7   : > { %v1828_v18 = vpop.permute.xlu1 %335  ;;  %v1830_v19 = vpop.permute.xlu0 %330 }
  0xb8   : > { %2487 = vst [vmem:[#allocation7_spill] sm:$0xff] %v1828_v18  ;;  %929 = vperm.xlu1 %1455, %v875_v16   ;;  %789 = vperm.xlu0 %1454, %v287_v17  }
  0xbb   : > { %v1838_v22 = vpop.permute.xlu1 %345  ;;  %v1840_v23 = vpop.permute.xlu0 %340 }
  0xbc   : > { %2488 = vst [vmem:[#allocation8_spill] sm:$0xff] %v1840_v23  ;;  %934 = vperm.xlu1 %1455, %v876_v20   ;;  %794 = vperm.xlu0 %1454, %v288_v21  }
  0xbf   : > { %v1848_v26 = vpop.permute.xlu1 %355  ;;  %v1850_v27 = vpop.permute.xlu0 %350 }
  0xc0   : > { %939 = vperm.xlu1 %1455, %v877_v24   ;;  %799 = vperm.xlu0 %1454, %v289_v25   ;;  %v564_v24 = vsub.s32 2, %v1885_v45 }
  0xc3   : > { %v366_v30 = vpop.permute.xlu1 %365  ;;  %v1858_v31 = vpop.permute.xlu0 %360 }
  0xc4   : > { %949 = vperm.xlu1 %1455, %v879_v28   ;;  %944 = vperm.xlu0 %1454, %v878_v29   ;;  %v391_v62 = vmul.f32 %v366_v30, %v1900_v56  ;;  %v407_v63 = vmul.f32 %v366_v30, %v1903_v57  ;;  %v399_v30 = vmul.f32 %v1818_v14, %v1903_v57 }
  0xc7   : > { %v376_v34 = vpop.permute.xlu1 %375  ;;  %v1866_v35 = vpop.permute.xlu0 %370 }
  0xc8   : > { %959 = vperm.xlu1 %1455, %v881_v32   ;;  %954 = vperm.xlu0 %1454, %v880_v33   ;;  %v393_v8 = vmul.f32 %v376_v34, %v1900_v56  ;;  %v409_v9 = vmul.f32 %v376_v34, %v1903_v57  ;;  %v1945_v32 = vrot.slane %v1896_v52, %v564_v24 }
  0xcb   : > { %v1868_v36 = vpop.permute.xlu1 %425  ;;  %v1870_v37 = vpop.permute.xlu0 %420 }
  0xcf   : > { %v1872_v38 = vpop.permute.xlu1 %435  ;;  %v1874_v39 = vpop.permute.xlu0 %430 }
  0xd3   : > { %v1876_v40 = vpop.permute.xlu1 %445  ;;  %v1878_v41 = vpop.permute.xlu0 %440 }
  0xd4   : > { %v519_v29 = vmul.f32 %v1876_v40, %v1909_v59 }
  0xd6   : > { %v551_v47 = vadd.f32 %v519_v29, %v399_v30 }
  0xd7   : > { %v1880_v43 = vpop.permute.xlu1 %455  ;;  %v1882_v44 = vpop.permute.xlu0 %450 }
  0xd8   : > { %2489 = vst [vmem:[#allocation9_spill] sm:$0xff] %v1880_v43  ;;  %2490 = vst [vmem:[#allocation10_spill] sm:$0xff] %v1882_v44  ;;  %v521_v33 = vmul.f32 %v1880_v43, %v1909_v59  ;;  %v520_v50 = vmul.f32 %v1882_v44, %v1909_v59 }
  0xdb   : > { %v466_v48 = vpop.permute.xlu1 %465  ;;  %v1891_v49 = vpop.permute.xlu0 %460 }
  0xdc   : > { %2492 = vst [vmem:[#allocation12_spill] sm:$0xff] %v1891_v49  ;;  %v522_v30 = vmul.f32 %v1891_v49, %v1909_v59 }
  0xdf   : > { %v476_v54 = vpop.permute.xlu1 %475  ;;  %v471_v55 = vpop.permute.xlu0 %470 }
  0xe3   : > { %v486_v60 = vpop.permute.xlu1 %485  ;;  %v1911_v61 = vpop.permute.xlu0 %480 }
  0xe4   : > { %v511_v0 = vmul.f32 %v486_v60, %v1906_v58  ;;  %v527_v1 = vmul.f32 %v486_v60, %v1909_v59  ;;  %v401_v60 = vmul.f32 %v1828_v18, %v1903_v57 }
  0xe6   : > { %v1917_v2 = vadd.f32 %v511_v0, %v391_v62  ;;  %v1919_v3 = vadd.f32 %v527_v1, %v407_v63  ;;  %v400_v62 = vmul.f32 %v1830_v19, %v1903_v57  ;;  %v1962_v63 = vrot.slane %v1894_v51, %v564_v24 }
  0xe7   : > { %v496_v4 = vpop.permute.xlu1 %495  ;;  %v1921_v5 = vpop.permute.xlu0 %490  ;;  %v387_v1 = vmul.f32 %v1838_v22, %v1900_v56 }
  0xe8   : > { %v513_v12 = vmul.f32 %v496_v4, %v1906_v58  ;;  %v529_v13 = vmul.f32 %v496_v4, %v1909_v59  ;;  %v553_v4 = vadd.f32 %v521_v33, %v401_v60  ;;  %v552_v29 = vadd.f32 %v520_v50, %v400_v62 }
  0xe9   : > { %v403_v33 = vmul.f32 %v1838_v22, %v1903_v57  ;;  %v509_v50 = vmul.f32 %v476_v54, %v1906_v58  ;;  %v405_v60 = vmul.f32 %v1848_v26, %v1903_v57  ;;  %v525_v62 = vmul.f32 %v476_v54, %v1909_v59 }
  0xea   : > { %v1927_v16 = vadd.f32 %v513_v12, %v393_v8  ;;  %v1929_v17 = vadd.f32 %v529_v13, %v409_v9  ;;  %v507_v8 = vmul.f32 %v466_v48, %v1906_v58  ;;  %v523_v9 = vmul.f32 %v466_v48, %v1909_v59 }
  0xeb   : > { %v1931_v20 = vpop.permute.xlu1 %577  ;;  %v1933_v21 = vpop.permute.xlu0 %572  ;;  %v402_v48 = vmul.f32 %v1840_v23, %v1903_v57  ;;  %v508_v22 = vmul.f32 %v471_v55, %v1906_v58  ;;  %v524_v23 = vmul.f32 %v471_v55, %v1909_v59 }
  0xec   : > { %v539_v49 = vadd.f32 %v507_v8, %v387_v1  ;;  %v404_v1 = vmul.f32 %v1850_v27, %v1903_v57 }
  0xef   : > { %v1936_v25 = vpop.permute.xlu1 %587  ;;  %v1938_v28 = vpop.permute.xlu0 %582 }
  0xf3   : > { %v1949_v34 = vpop.permute.xlu1 %597  ;;  %v1951_v46 = vpop.permute.xlu0 %592 }
  0xf4   : > { %v671_v53 = vmul.f32 %v1949_v34, %v1945_v32 }
  0xf6   : > { %v1964_v0 = vadd.f32 %v671_v53, %v551_v47  ;;  %v389_v53 = vmul.f32 %v1848_v26, %v1900_v56 }
  0xf7   : > { %v1970_v12 = vpop.permute.xlu1 %607  ;;  %v1972_v13 = vpop.permute.xlu0 %602 }
  0xf8   : > { %2493 = vst [vmem:[#allocation13_spill] sm:$0xff] %v1964_v0  ;;  %2494 = vst [vmem:[#allocation14_spill] sm:$0xff] %v1970_v12  ;;  %v673_v24 = vmul.f32 %v1970_v12, %v1945_v32  ;;  %v672_v47 = vmul.f32 %v1972_v13, %v1945_v32  ;;  %v555_v12 = vadd.f32 %v523_v9, %v403_v33 }
  0xf9   : > { %2495 = vst [vmem:[#allocation15_spill] sm:$0xff] %v1972_v13  ;;  %v554_v13 = vadd.f32 %v522_v30, %v402_v48  ;;  %v541_v8 = vadd.f32 %v509_v50, %v389_v53  ;;  %v557_v9 = vadd.f32 %v525_v62, %v405_v60  ;;  %v526_v33 = vmul.f32 %v1911_v61, %v1909_v59 }
  0xfa   : > { %v1990_v42 = vadd.f32 %v673_v24, %v553_v4  ;;  %v1992_v0 = vadd.f32 %v672_v47, %v552_v29  ;;  %v388_v4 = vmul.f32 %v1850_v27, %v1900_v56  ;;  %v556_v47 = vadd.f32 %v524_v23, %v404_v1 }
  0xfb   : > { %v618_v18 = vpop.permute.xlu1 %617  ;;  %v1996_v43 = vpop.permute.xlu0 %612  ;;  %v406_v23 = vmul.f32 %v1858_v31, %v1903_v57 }
  0xfc   : > { %2496 = vst [vmem:[#allocation16_spill] sm:$0xff] %v1990_v42  ;;  %v659_v44 = vmul.f32 %v618_v18, %v1962_v63  ;;  %v675_v26 = vmul.f32 %v618_v18, %v1945_v32  ;;  %v674_v54 = vmul.f32 %v1996_v43, %v1945_v32  ;;  %v540_v24 = vadd.f32 %v508_v22, %v388_v4 }
  0xfd   : > { %v510_v18 = vmul.f32 %v1911_v61, %v1906_v58  ;;  %v558_v22 = vadd.f32 %v526_v33, %v406_v23 }
  0xfe   : > { %v2006_v55 = vadd.f32 %v659_v44, %v539_v49  ;;  %v2008_v29 = vadd.f32 %v675_v26, %v555_v12  ;;  %v2010_v30 = vadd.f32 %v674_v54, %v554_v13  ;;  %v390_v12 = vmul.f32 %v1858_v31, %v1900_v56 }
  0xff   : > { %v628_v48 = vpop.permute.xlu1 %627  ;;  %v623_v42 = vpop.permute.xlu0 %622  ;;  %v512_v26 = vmul.f32 %v1921_v5, %v1906_v58 }
 0x100   : > { %2497 = vst [vmem:[#allocation17_spill] sm:$0xff] %v2008_v29  ;;  %2498 = vst [vmem:[#allocation18_spill] sm:$0xff] %v2010_v30  ;;  %v661_v27 = vmul.f32 %v628_v48, %v1962_v63  ;;  %v677_v53 = vmul.f32 %v628_v48, %v1945_v32  ;;  %v660_v44 = vmul.f32 %v623_v42, %v1962_v63 }
 0x101   : > { %v676_v49 = vmul.f32 %v623_v42, %v1945_v32  ;;  %v542_v62 = vadd.f32 %v510_v18, %v390_v12  ;;  %v528_v42 = vmul.f32 %v1921_v5, %v1909_v59 }
 0x102   : > { %v2024_v13 = vadd.f32 %v661_v27, %v541_v8  ;;  %v2026_v50 = vadd.f32 %v677_v53, %v557_v9  ;;  %v2028_v61 = vadd.f32 %v660_v44, %v540_v24  ;;  %v392_v24 = vmul.f32 %v1866_v35, %v1900_v56 }
 0x103   : > { %v2030_v60 = vadd.f32 %v676_v49, %v556_v47  ;;  %v638_v54 = vpop.permute.xlu1 %637  ;;  %v633_v4 = vpop.permute.xlu0 %632  ;;  %v408_v47 = vmul.f32 %v1866_v35, %v1903_v57 }
 0x104   : > { %2499 = vst [vmem:[#allocation19_spill] sm:$0xff] %v2024_v13  ;;  %2500 = vst [vmem:[#allocation20_spill] sm:$0xff] %v2026_v50  ;;  %v663_v31 = vmul.f32 %v638_v54, %v1962_v63  ;;  %v679_v1 = vmul.f32 %v638_v54, %v1945_v32  ;;  %v662_v8 = vmul.f32 %v633_v4, %v1962_v63 }
 0x105   : > { %2501 = vst [vmem:[#allocation21_spill] sm:$0xff] %v2028_v61  ;;  %2502 = vst [vmem:[#allocation22_spill] sm:$0xff] %v2030_v60  ;;  %v678_v9 = vmul.f32 %v633_v4, %v1945_v32  ;;  %v544_v27 = vadd.f32 %v512_v26, %v392_v24  ;;  %v560_v53 = vadd.f32 %v528_v42, %v408_v47 }
 0x106   : > { %v2045_v18 = vadd.f32 %v663_v31, %v1917_v2  ;;  %v2048_v5 = vadd.f32 %v679_v1, %v1919_v3  ;;  %v2050_v33 = vadd.f32 %v662_v8, %v542_v62  ;;  %v499_v24 = vmul.f32 %v1868_v36, %v1906_v58 }
 0x107   : > { %v2052_v48 = vadd.f32 %v678_v9, %v558_v22  ;;  %v648_v44 = vpop.permute.xlu1 %647  ;;  %v643_v49 = vpop.permute.xlu0 %642  ;;  %v2138_v50 = vmul.f32 %v1820_v15, %v1903_v57 }
 0x108   : > { %2503 = vst [vmem:[#allocation23_spill] sm:$0xff] %v2045_v18  ;;  %2504 = vst [vmem:[#allocation24_spill] sm:$0xff] %v2048_v5  ;;  %v665_v12 = vmul.f32 %v648_v44, %v1962_v63  ;;  %v681_v23 = vmul.f32 %v648_v44, %v1945_v32  ;;  %v664_v35 = vmul.f32 %v643_v49, %v1962_v63 }
 0x109   : > { %2505 = vst [vmem:[#allocation25_spill] sm:$0xff] %v2050_v33  ;;  %2506 = vst [vmem:[#allocation26_spill] sm:$0xff] %v2052_v48  ;;  %v680_v2 = vmul.f32 %v643_v49, %v1945_v32  ;;  %v498_v44 = vmul.f32 %v1870_v37, %v1906_v58  ;;  %v653_v33 = vmul.f32 %v1936_v25, %v1962_v63 }
 0x10a   : > { %v2059_v54 = vadd.f32 %v665_v12, %v1927_v16  ;;  %v2062_v3 = vadd.f32 %v681_v23, %v1929_v17  ;;  %v2064_v62 = vadd.f32 %v664_v35, %v544_v27  ;;  %v716_v16 = vsub.s32 3, %v1885_v45 }
 0x10b   : > { %v2066_v22 = vadd.f32 %v680_v2, %v560_v53  ;;  %v2068_v26 = vpop.permute.xlu1 %729  ;;  %v725_v42 = vpop.permute.xlu0 %724  ;;  %v380_v27 = vmul.f32 %v1798_v6, %v1900_v56  ;;  %v2092_v53 = vmul.f32 %v1798_v6, %v1903_v57  ;;  %v378_v12 = vmul.f32 %v1800_v7, %v1900_v56 }
 0x10c   : > { %2507 = vst [vmem:[#allocation27_spill] sm:$0xff] %v2059_v54  ;;  %2508 = vst [vmem:[#allocation28_spill] sm:$0xff] %v2062_v3  ;;  %v2086_v47 = vrot.slane %v1894_v51, %v716_v16  ;;  %v2097_v49 = vrot.slane %v1896_v52, %v716_v16  ;;  %v394_v51 = vmul.f32 %v1800_v7, %v1903_v57 }
 0x10d   : > { %2509 = vst [vmem:[#allocation29_spill] sm:$0xff] %v2064_v62  ;;  %2510 = vst [vmem:[#allocation30_spill] sm:$0xff] %v2066_v22  ;;  %v381_v23 = vmul.f32 %v1808_v10, %v1900_v56  ;;  %v379_v35 = vmul.f32 %v1810_v11, %v1900_v56  ;;  %v2113_v52 = vmul.f32 %v1808_v10, %v1903_v57 }
 0x10e   : > { %v395_v16 = vmul.f32 %v1810_v11, %v1903_v57  ;;  %v651_v7 = vmul.f32 %v1931_v20, %v1962_v63  ;;  %v650_v45 = vmul.f32 %v1933_v21, %v1962_v63  ;;  %v2123_v3 = vmul.f32 %v1818_v14, %v1900_v56 }
 0x10f   : > { %v2070_v4 = vpop.permute.xlu1 %739  ;;  %v2072_v31 = vpop.permute.xlu0 %734  ;;  %v515_v22 = vmul.f32 %v1868_v36, %v1909_v59  ;;  %v531_v5 = vadd.f32 %v499_v24, %v379_v35  ;;  %v514_v10 = vmul.f32 %v1870_v37, %v1909_v59  ;;  %v530_v54 = vadd.f32 %v498_v44, %v378_v12 }
 0x110   : > { %v500_v11 = vmul.f32 %v1874_v39, %v1906_v58  ;;  %v803_v48 = vmul.f32 %v2068_v26, %v2086_v47  ;;  %v802_v62 = vmul.f32 %v725_v42, %v2086_v47  ;;  %v382_v14 = vmul.f32 %v1820_v15, %v1900_v56 }
 0x111   : > { %v501_v36 = vmul.f32 %v1872_v38, %v1906_v58  ;;  %v666_v37 = vmul.f32 %v1933_v21, %v1945_v32  ;;  %v2150_v12 = vmul.f32 %v1830_v19, %v1900_v56  ;;  %v683_v35 = vadd.f32 %v651_v7, %v531_v5 }
 0x112   : > { %v682_v18 = vadd.f32 %v650_v45, %v530_v54  ;;  %v652_v15 = vmul.f32 %v1938_v28, %v1962_v63  ;;  %v547_v57 = vadd.f32 %v515_v22, %v395_v16  ;;  %v546_v60 = vadd.f32 %v514_v10, %v394_v51 }
 0x113   : > { %v2074_v1 = vpop.permute.xlu1 %749  ;;  %v2076_v8 = vpop.permute.xlu0 %744  ;;  %v818_v21 = vmul.f32 %v725_v42, %v2097_v49  ;;  %v532_v29 = vadd.f32 %v500_v11, %v380_v27  ;;  %v804_v13 = vmul.f32 %v2072_v31, %v2086_v47  ;;  %v835_v30 = vadd.f32 %v803_v48, %v683_v35 }
 0x114   : > { %v834_v61 = vadd.f32 %v802_v62, %v682_v18  ;;  %v533_v19 = vadd.f32 %v501_v36, %v381_v23  ;;  %v502_v45 = vmul.f32 %v1878_v41, %v1906_v58  ;;  %v667_v5 = vmul.f32 %v1931_v20, %v1945_v32 }
 0x115   : > { %v698_v54 = vadd.f32 %v666_v37, %v546_v60  ;;  %v684_v16 = vadd.f32 %v652_v15, %v532_v29  ;;  %v805_v42 = vmul.f32 %v2070_v4, %v2086_v47  ;;  %v516_v48 = vmul.f32 %v1874_v39, %v1909_v59 }
 0x116   : > { %v685_v18 = vadd.f32 %v653_v33, %v533_v19  ;;  %v819_v62 = vmul.f32 %v2068_v26, %v2097_v49  ;;  %v654_v20 = vmul.f32 %v1951_v46, %v1962_v63  ;;  %v503_v29 = vmul.f32 %v1876_v40, %v1906_v58 }
 0x117   : > { %v2079_v9 = vpop.permute.xlu1 %759  ;;  %v2081_v17 = vpop.permute.xlu0 %754  ;;  %v850_v23 = vadd.f32 %v818_v21, %v698_v54  ;;  %v836_v60 = vadd.f32 %v804_v13, %v684_v16  ;;  %v699_v36 = vadd.f32 %v667_v5, %v547_v57  ;;  %v534_v37 = vadd.f32 %v502_v45, %v382_v14 }
 0x118   : > { %v806_v26 = vmul.f32 %v2076_v8, %v2086_v47  ;;  %v837_v35 = vadd.f32 %v805_v42, %v685_v18  ;;  %v517_v13 = vmul.f32 %v1872_v38, %v1909_v59  ;;  %v548_v21 = vadd.f32 %v516_v48, %v2092_v53 }
 0x119   : > { %v820_v40 = vmul.f32 %v2072_v31, %v2097_v49  ;;  %v851_v57 = vadd.f32 %v819_v62, %v699_v36  ;;  %v686_v14 = vadd.f32 %v654_v20, %v534_v37  ;;  %v669_v5 = vmul.f32 %v1936_v25, %v1945_v32  ;;  %v2511_v31 = vld [vmem:[#allocation10_spill] sm:$0xff]  ;;  %v2512_v62 = vld [vmem:[#allocation15_spill] sm:$0xff] }
 0x11a   : > { %v535_v53 = vadd.f32 %v503_v29, %v2123_v3  ;;  %v504_v42 = vmul.f32 %v2511_v31, %v1906_v58  ;;  %v549_v48 = vadd.f32 %v517_v13, %v2113_v52  ;;  %v518_v25 = vmul.f32 %v1878_v41, %v1909_v59  ;;  %v2513_v41 = vld [vmem:[#allocation9_spill] sm:$0xff] }
 0x11b   : > { %v2107_v6 = vpop.permute.xlu1 %769  ;;  %v2109_v2 = vpop.permute.xlu0 %764  ;;  %v505_v59 = vmul.f32 %v2513_v41, %v1906_v58 }
 0x11f   : > { %v2144_v24 = vpop.permute.xlu1 %779  ;;  %v2146_v44 = vpop.permute.xlu0 %774 }
 0x123   : > { %v890_v22 = vpop.permute.xlu1 %889  ;;  %v885_v51 = vpop.permute.xlu0 %884 }
 0x124   : > { %v963_v27 = vadd.f32 %v890_v22, %v835_v30  ;;  %v962_v7 = vadd.f32 %v885_v51, %v834_v61  ;;  %v668_v30 = vmul.f32 %v1938_v28, %v1945_v32  ;;  %v978_v61 = vadd.f32 %v885_v51, %v850_v23 }
 0x125   : > { %v655_v28 = vmul.f32 %v1949_v34, %v1962_v63  ;;  %v979_v51 = vadd.f32 %v890_v22, %v851_v57  ;;  %v821_v22 = vmul.f32 %v2070_v4, %v2097_v49  ;;  %v656_v23 = vmul.f32 %v2512_v62, %v1962_v63 }
 0x126   : > { %v995_v10 = vmax.f32 %v963_v27, 0.0  ;;  %v994_v11 = vmax.f32 %v962_v7, 0.0  ;;  %v700_v54 = vadd.f32 %v668_v30, %v548_v21  ;;  %v1010_v38 = vmax.f32 %v978_v61, 0.0 }
 0x127   : > { %v900_v39 = vpop.permute.xlu1 %899  ;;  %v895_v33 = vpop.permute.xlu0 %894  ;;  %v807_v27 = vmul.f32 %v2074_v1, %v2086_v47  ;;  %v838_v7 = vadd.f32 %v806_v26, %v686_v14  ;;  %v687_v3 = vadd.f32 %v655_v28, %v535_v53  ;;  %v1011_v36 = vmax.f32 %v979_v51, 0.0  ;;  %v2514_v26 = vld [vmem:[#allocation7_spill] sm:$0xff]  ;;  %v2517_v51 = vld [vmem:[#allocation8_spill] sm:$0xff] }
 0x128   : > { %v964_v15 = vadd.f32 %v895_v33, %v836_v60  ;;  %1029 = vadd.xlane.f32.xlu1 %v995_v10  ;;  %1027 = vadd.xlane.f32.xlu0 %v994_v11  ;;  %v965_v19 = vadd.f32 %v900_v39, %v837_v35  ;;  %v852_v18 = vadd.f32 %v820_v40, %v700_v54 }
 0x129   : > { %v701_v10 = vadd.f32 %v669_v5, %v549_v48  ;;  %v670_v11 = vmul.f32 %v1951_v46, %v1945_v32  ;;  %v536_v4 = vadd.f32 %v504_v42, %v2150_v12  ;;  %v808_v30 = vmul.f32 %v2081_v17, %v2086_v47 }
 0x12a   : > { %v996_v45 = vmax.f32 %v964_v15, 0.0  ;;  %v997_v60 = vmax.f32 %v965_v19, 0.0  ;;  %v980_v29 = vadd.f32 %v895_v33, %v852_v18  ;;  %v839_v61 = vadd.f32 %v807_v27, %v687_v3  ;;  %v2515_v15 = vld [vmem:[#allocation14_spill] sm:$0xff] }
 0x12b   : > { %v2186_v16 = vpop.permute.xlu1 %909  ;;  %v905_v34 = vpop.permute.xlu0 %904  ;;  %v385_v35 = vmul.f32 %v2514_v26, %v1900_v56  ;;  %v550_v32 = vadd.f32 %v518_v25, %v2138_v50  ;;  %v822_v46 = vmul.f32 %v2076_v8, %v2097_v49  ;;  %v853_v33 = vadd.f32 %v821_v22, %v701_v10 }
 0x12c   : > { %1031 = vadd.xlane.f32.xlu1 %v996_v45  ;;  %1059 = vadd.xlane.f32.xlu0 %v1010_v38  ;;  %v966_v20 = vadd.f32 %v905_v34, %v838_v7  ;;  %v657_v13 = vmul.f32 %v2515_v15, %v1962_v63  ;;  %v688_v12 = vadd.f32 %v656_v23, %v536_v4  ;;  %v1012_v14 = vmax.f32 %v980_v29, 0.0  ;;  %v2516_v45 = vld [vmem:[#allocation12_spill] sm:$0xff] }
 0x12d   : > { %v967_v21 = vadd.f32 %v2186_v16, %v839_v61  ;;  %v702_v57 = vadd.f32 %v670_v11, %v550_v32  ;;  %v981_v28 = vadd.f32 %v900_v39, %v853_v33  ;;  %v537_v19 = vadd.f32 %v505_v59, %v385_v35  ;;  %v2519_v32 = vld [vmem:[#allocation16_spill] sm:$0xff] }
 0x12e   : > { %v998_v40 = vmax.f32 %v966_v20, 0.0  ;;  %v506_v5 = vmul.f32 %v2516_v45, %v1906_v58  ;;  %v809_v50 = vmul.f32 %v2079_v9, %v2086_v47  ;;  %v840_v8 = vadd.f32 %v808_v30, %v688_v12  ;;  %v2520_v12 = vld [vmem:[#allocation21_spill] sm:$0xff] }
 0x12f   : > { %v2202_v52 = vpop.permute.xlu1 %919  ;;  %v915_v37 = vpop.permute.xlu0 %914  ;;  %v386_v38 = vmul.f32 %v2517_v51, %v1900_v56  ;;  %v823_v53 = vmul.f32 %v2074_v1, %v2097_v49  ;;  %v854_v31 = vadd.f32 %v822_v46, %v702_v57  ;;  %v689_v42 = vadd.f32 %v657_v13, %v537_v19  ;;  %v2518_v1 = vld [vmem:[#allocation13_spill] sm:$0xff] }
 0x130   : > { %1033 = vadd.xlane.f32.xlu1 %v997_v60  ;;  %1061 = vadd.xlane.f32.xlu0 %v1011_v36  ;;  %v658_v58 = vmul.f32 %v1996_v43, %v1962_v63  ;;  %v968_v27 = vadd.f32 %v915_v37, %v840_v8  ;;  %v999_v7 = vmax.f32 %v967_v21, 0.0  ;;  %v1013_v25 = vmax.f32 %v981_v28, 0.0 }
 0x131   : > { %v982_v48 = vadd.f32 %v905_v34, %v854_v31  ;;  %v538_v22 = vadd.f32 %v506_v5, %v386_v38  ;;  %v810_v18 = vmul.f32 %v2109_v2, %v2086_v47  ;;  %v841_v3 = vadd.f32 %v809_v50, %v689_v42  ;;  %v2522_v50 = vld [vmem:[#allocation19_spill] sm:$0xff]  ;;  %v2523_v38 = vld [vmem:[#allocation17_spill] sm:$0xff] }
 0x132   : > { %v824_v56 = vmul.f32 %v2081_v17, %v2097_v49  ;;  %v855_v62 = vadd.f32 %v823_v53, %v2518_v1  ;;  %v1000_v63 = vmax.f32 %v968_v27, 0.0  ;;  %v811_v11 = vmul.f32 %v2107_v6, %v2086_v47 }
 0x133   : > { %v2221_v54 = vpop.permute.xlu0 %784  ;;  %v925_v39 = vpop.permute.xlu1 %924  ;;  %v690_v20 = vadd.f32 %v658_v58, %v538_v22  ;;  %v969_v43 = vadd.f32 %v2202_v52, %v841_v3  ;;  %v1014_v10 = vmax.f32 %v982_v48, 0.0  ;;  %v825_v17 = vmul.f32 %v2079_v9, %v2097_v49  ;;  %v2525_v22 = vld [vmem:[#allocation22_spill] sm:$0xff] }
 0x134   : > { %1035 = vadd.xlane.f32.xlu1 %v998_v40  ;;  %1063 = vadd.xlane.f32.xlu0 %v1012_v14  ;;  %v983_v34 = vadd.f32 %v2186_v16, %v855_v62  ;;  %v856_v36 = vadd.f32 %v824_v56, %v1992_v0  ;;  %v812_v16 = vmul.f32 %v2146_v44, %v2086_v47  ;;  %v2521_v40 = vld [vmem:[#allocation18_spill] sm:$0xff] }
 0x135   : > { %v842_v29 = vadd.f32 %v810_v18, %v690_v20  ;;  %v1001_v59 = vmax.f32 %v969_v43, 0.0  ;;  %v843_v26 = vadd.f32 %v811_v11, %v2006_v55  ;;  %v826_v35 = vmul.f32 %v2109_v2, %v2097_v49  ;;  %v2526_v43 = vld [vmem:[#allocation23_spill] sm:$0xff] }
 0x136   : > { %v984_v4 = vadd.f32 %v915_v37, %v856_v36  ;;  %v1015_v61 = vmax.f32 %v983_v34, 0.0  ;;  %v857_v9 = vadd.f32 %v825_v17, %v2519_v32  ;;  %v813_v13 = vmul.f32 %v2144_v24, %v2086_v47 }
 0x137   : > { %v2234_v23 = vpop.permute.xlu0 %789  ;;  %v930_v60 = vpop.permute.xlu1 %929  ;;  %v970_v41 = vadd.f32 %v925_v39, %v842_v29  ;;  %v844_v21 = vadd.f32 %v812_v16, %v2520_v12  ;;  %v827_v55 = vmul.f32 %v2107_v6, %v2097_v49  ;;  %v858_v2 = vadd.f32 %v826_v35, %v2521_v40  ;;  %v2529_v16 = vld [vmem:[#allocation26_spill] sm:$0xff] }
 0x138   : > { %1037 = vadd.xlane.f32.xlu1 %v999_v7  ;;  %1065 = vadd.xlane.f32.xlu0 %v1013_v25  ;;  %v971_v0 = vadd.f32 %v930_v60, %v843_v26  ;;  %v985_v37 = vadd.f32 %v2202_v52, %v857_v9  ;;  %v1016_v15 = vmax.f32 %v984_v4, 0.0  ;;  %v814_v52 = vmul.f32 %v2221_v54, %v2086_v47  ;;  %v2524_v7 = vld [vmem:[#allocation25_spill] sm:$0xff]  ;;  %v2532_v40 = vld [vmem:[#allocation30_spill] sm:$0xff] }
 0x139   : > { %v1002_v33 = vmax.f32 %v970_v41, 0.0  ;;  %v986_v19 = vadd.f32 %v925_v39, %v858_v2  ;;  %v845_v8 = vadd.f32 %v813_v13, %v2522_v50  ;;  %v828_v51 = vmul.f32 %v2146_v44, %v2097_v49 }
 0x13a   : > { %v1003_v14 = vmax.f32 %v971_v0, 0.0  ;;  %v1017_v5 = vmax.f32 %v985_v37, 0.0  ;;  %v859_v6 = vadd.f32 %v827_v55, %v2523_v38  ;;  %v815_v39 = vmul.f32 %v2234_v23, %v2086_v47  ;;  %v2530_v0 = vld [vmem:[#allocation27_spill] sm:$0xff]  ;;  %v2531_v37 = vld [vmem:[#allocation24_spill] sm:$0xff] }
 0x13b   : > { %v2243_v30 = vpop.permute.xlu0 %794  ;;  %v935_v46 = vpop.permute.xlu1 %934  ;;  %v1018_v42 = vmax.f32 %v986_v19, 0.0  ;;  %v846_v48 = vadd.f32 %v814_v52, %v2524_v7  ;;  %v829_v25 = vmul.f32 %v2144_v24, %v2097_v49  ;;  %v860_v18 = vadd.f32 %v828_v51, %v2525_v22 }
 0x13c   : > { %1039 = vadd.xlane.f32.xlu1 %v1000_v63  ;;  %1067 = vadd.xlane.f32.xlu0 %v1014_v10  ;;  %v972_v28 = vadd.f32 %v935_v46, %v844_v21  ;;  %v987_v58 = vadd.f32 %v930_v60, %v859_v6  ;;  %v816_v20 = vmul.f32 %v2243_v30, %v2086_v47  ;;  %v2527_v60 = vld [vmem:[#allocation20_spill] sm:$0xff] }
 0x13d   : > { %v988_v1 = vadd.f32 %v935_v46, %v860_v18  ;;  %v847_v63 = vadd.f32 %v815_v39, %v2526_v43  ;;  %v830_v34 = vmul.f32 %v2221_v54, %v2097_v49  ;;  %v861_v10 = vadd.f32 %v829_v25, %v2527_v60 }
 0x13e   : > { %v1004_v53 = vmax.f32 %v972_v28, 0.0  ;;  %v1019_v56 = vmax.f32 %v987_v58, 0.0 }
 0x13f   : > { %v800_v57 = vpop.permute.xlu0 %799  ;;  %v940_v45 = vpop.permute.xlu1 %939  ;;  %v1020_v29 = vmax.f32 %v988_v1, 0.0  ;;  %v862_v26 = vadd.f32 %v830_v34, %v2529_v16 }
 0x140   : > { %1041 = vadd.xlane.f32.xlu1 %v1001_v59  ;;  %1069 = vadd.xlane.f32.xlu0 %v1015_v61  ;;  %v973_v31 = vadd.f32 %v940_v45, %v845_v8  ;;  %v989_v17 = vadd.f32 %v940_v45, %v861_v10  ;;  %v817_v41 = vmul.f32 %v800_v57, %v2086_v47  ;;  %v2528_v59 = vld [vmem:[#allocation29_spill] sm:$0xff]  ;;  %v2533_v45 = vld [vmem:[#allocation28_spill] sm:$0xff] }
 0x141   : > { %v848_v4 = vadd.f32 %v816_v20, %v2528_v59  ;;  %v831_v61 = vmul.f32 %v2234_v23, %v2097_v49  ;;  %v832_v47 = vmul.f32 %v2243_v30, %v2097_v49  ;;  %v833_v55 = vmul.f32 %v800_v57, %v2097_v49 }
 0x142   : > { %v1005_v44 = vmax.f32 %v973_v31, 0.0  ;;  %v1021_v32 = vmax.f32 %v989_v17, 0.0 }
 0x143   : > { %v945_v27 = vpop.permute.xlu0 %944  ;;  %v950_v62 = vpop.permute.xlu1 %949  ;;  %v864_v2 = vadd.f32 %v832_v47, %v2532_v40 }
 0x144   : > { %1043 = vadd.xlane.f32.xlu1 %v1002_v33  ;;  %1071 = vadd.xlane.f32.xlu0 %v1016_v15  ;;  %v974_v3 = vadd.f32 %v945_v27, %v846_v48  ;;  %v975_v24 = vadd.f32 %v950_v62, %v847_v63  ;;  %v990_v9 = vadd.f32 %v945_v27, %v862_v26 }
 0x145   : > { %v849_v33 = vadd.f32 %v817_v41, %v2530_v0  ;;  %v863_v15 = vadd.f32 %v831_v61, %v2531_v37 }
 0x146   : > { %v1006_v11 = vmax.f32 %v974_v3, 0.0  ;;  %v1007_v54 = vmax.f32 %v975_v24, 0.0  ;;  %v1022_v21 = vmax.f32 %v990_v9, 0.0  ;;  %v2534_v3 = vlaneseq  ;;  %v2535_v24 = vld [vmem:[#allocation11_spill] sm:$0xff] }
 0x147   : > { %v955_v36 = vpop.permute.xlu0 %954  ;;  %v960_v46 = vpop.permute.xlu1 %959  ;;  %v991_v23 = vadd.f32 %v950_v62, %v863_v15 }
 0x148   : > { %1045 = vadd.xlane.f32.xlu1 %v1003_v14  ;;  %1073 = vadd.xlane.f32.xlu0 %v1017_v5  ;;  %v976_v35 = vadd.f32 %v955_v36, %v848_v4  ;;  %v977_v13 = vadd.f32 %v960_v46, %v849_v33  ;;  %v992_v19 = vadd.f32 %v955_v36, %v864_v2 }
 0x149   : > { %v1023_v14 = vmax.f32 %v991_v23, 0.0  ;;  %v865_v5 = vadd.f32 %v833_v55, %v2533_v45 }
 0x14a   : > { %v1008_v12 = vmax.f32 %v976_v35, 0.0  ;;  %v1009_v28 = vmax.f32 %v977_v13, 0.0  ;;  %v1024_v52 = vmax.f32 %v992_v19, 0.0 }
 0x14b   : > { %v993_v30 = vadd.f32 %v960_v46, %v865_v5 }
 0x14c   : > { %1047 = vadd.xlane.f32.xlu1 %v1004_v53  ;;  %1075 = vadd.xlane.f32.xlu0 %v1018_v42 }
 0x14d   : > { %v1025_v50 = vmax.f32 %v993_v30, 0.0 }
 0x150   : > { %1049 = vadd.xlane.f32.xlu1 %v1005_v44  ;;  %1077 = vadd.xlane.f32.xlu0 %v1019_v56  ;;  %v1124_v56 = vand.u32 127, %v2534_v3 }
 0x152   : > { %v1129_v20 = vadd.s32 4294967288, %v1124_v56  ;;  %v1136_v43 = vadd.s32 4294967280, %v1124_v56  ;;  %v1143_v60 = vadd.s32 4294967272, %v1124_v56  ;;  %v1150_v10 = vadd.s32 4294967264, %v1124_v56 }
 0x153   : > { %v1157_v17 = vadd.s32 4294967256, %v1124_v56  ;;  %v1164_v41 = vadd.s32 4294967248, %v1124_v56  ;;  %v1171_v59 = vadd.s32 4294967240, %v1124_v56  ;;  %v1178_v61 = vadd.s32 4294967232, %v1124_v56 }
 0x154   : > { %1051 = vadd.xlane.f32.xlu1 %v1006_v11  ;;  %1079 = vadd.xlane.f32.xlu0 %v1020_v29  ;;  %v1132_v11 = vsub.s32 %v1129_v20, %v2535_v24  ;;  %v1127_v29 = vsub.s32 %v1124_v56, %v2535_v24  ;;  %v1139_v36 = vsub.s32 %v1136_v43, %v2535_v24  ;;  %v1185_v16 = vadd.s32 4294967224, %v1124_v56 }
 0x155   : > { %v1153_v35 = vsub.s32 %v1150_v10, %v2535_v24  ;;  %v1160_v9 = vsub.s32 %v1157_v17, %v2535_v24  ;;  %v1199_v46 = vadd.s32 4294967208, %v1124_v56  ;;  %v1206_v0 = vadd.s32 4294967200, %v1124_v56 }
 0x156   : > { %v1167_v33 = vsub.s32 %v1164_v41, %v2535_v24  ;;  %v1174_v47 = vsub.s32 %v1171_v59, %v2535_v24  ;;  %v1213_v37 = vadd.s32 4294967192, %v1124_v56  ;;  %v1181_v15 = vsub.s32 %v1178_v61, %v2535_v24 }
 0x157   : > { %v2347_v13 = vsub.s32 %v1185_v16, %v2535_v24  ;;  %v1227_v55 = vadd.s32 4294967176, %v1124_v56  ;;  %v1202_v5 = vsub.s32 %v1199_v46, %v2535_v24  ;;  %v2361_v30 = vsub.s32 %v1206_v0, %v2535_v24 }
 0x158   : > { %1053 = vadd.xlane.f32.xlu1 %v1007_v54  ;;  %1081 = vadd.xlane.f32.xlu0 %v1021_v32  ;;  %v1146_v54 = vsub.s32 %v1143_v60, %v2535_v24  ;;  %v1192_v32 = vadd.s32 4294967216, %v1124_v56 }
 0x15c   : > { %1055 = vadd.xlane.f32.xlu1 %v1008_v12  ;;  %1083 = vadd.xlane.f32.xlu0 %v1022_v21  ;;  %v1220_v21 = vadd.s32 4294967184, %v1124_v56  ;;  %v2375_v56 = vsub.s32 %v1227_v55, %v2535_v24 }
 0x160   : > { %1057 = vadd.xlane.f32.xlu1 %v1009_v28  ;;  %1085 = vadd.xlane.f32.xlu0 %v1023_v14  ;;  %v1195_v14 = vsub.s32 %v1192_v32, %v2535_v24 }
 0x164   : > { %1087 = vadd.xlane.f32.xlu0 %v1024_v52 }
 0x168   : > { %1089 = vadd.xlane.f32.xlu0 %v1025_v50 }
 0x1b5   : > { %v2288_v8 = vpop.xlane.xlu1 %1029  ;;  %v2290_v51 = vpop.xlane.xlu0 %1027 }
 0x1b6   : > { %v1133_v40 = vrot.slane %v2288_v8, %v1132_v11  ;;  %v1128_v2 = vrot.slane %v2290_v51, %v1127_v29  ;;  %v2367_v51 = vsub.s32 %v1213_v37, %v2535_v24 }
 0x1b9   : > { %v2292_v49 = vpop.xlane.xlu1 %1031  ;;  %v2294_v57 = vpop.xlane.xlu0 %1059 }
 0x1ba   : > { %v1140_v19 = vrot.slane %v2292_v49, %v1139_v36  ;;  %v1237_v52 = vrot.slane %v2294_v57, %v1127_v29  ;;  %v1135_v57 = vsel %vm1134_vm0, %v1133_v40, %v1128_v2 }
 0x1bd   : > { %v2296_v38 = vpop.xlane.xlu1 %1033  ;;  %v2298_v6 = vpop.xlane.xlu0 %1061 }
 0x1be   : > { %v1241_v28 = vrot.slane %v2298_v6, %v1132_v11  ;;  %v1147_v50 = vrot.slane %v2296_v38, %v1146_v54 }
 0x1c0   : > { %v1242_v38 = vsel %vm1134_vm0, %v1241_v28, %v1237_v52  ;;  %v1026_v52 = vld [vmem:[#allocation2] sm:$0x3] }
 0x1c1   : > { %v2300_v53 = vpop.xlane.xlu1 %1035  ;;  %v2302_v31 = vpop.xlane.xlu0 %1063 }
 0x1c2   : > { %v1246_v45 = vrot.slane %v2302_v31, %v1139_v36  ;;  %v1154_v49 = vrot.slane %v2300_v53, %v1153_v35  ;;  %v2372_v31 = vsub.s32 %v1220_v21, %v2535_v24  ;;  %v1142_v53 = vsel %vm1141_vm1, %v1140_v19, %v1135_v57 }
 0x1c3   : > { %v1149_v24 = vsel %vm1148_vm2, %v1147_v50, %v1142_v53 }
 0x1c5   : > { %v2304_v42 = vpop.xlane.xlu1 %1037  ;;  %v2306_v58 = vpop.xlane.xlu0 %1065 }
 0x1c6   : > { %v1251_v8 = vrot.slane %v2306_v58, %v1146_v54  ;;  %v1161_v58 = vrot.slane %v2304_v42, %v1160_v9 }
 0x1c9   : > { %v2308_v27 = vpop.xlane.xlu1 %1039  ;;  %v2310_v39 = vpop.xlane.xlu0 %1067 }
 0x1ca   : > { %v1256_v6 = vrot.slane %v2310_v39, %v1153_v35  ;;  %v1247_v39 = vsel %vm1141_vm1, %v1246_v45, %v1242_v38  ;;  %v1168_v43 = vrot.slane %v2308_v27, %v1167_v33 }
 0x1cb   : > { %v1252_v11 = vsel %vm1148_vm2, %v1251_v8, %v1247_v39 }
 0x1cc   : > { %v1257_v17 = vsel %vm1155_vm3, %v1256_v6, %v1252_v11 }
 0x1cd   : > { %v2312_v7 = vpop.xlane.xlu1 %1041  ;;  %v2314_v48 = vpop.xlane.xlu0 %1069 }
 0x1ce   : > { %v1261_v20 = vrot.slane %v2314_v48, %v1160_v9  ;;  %v1175_v29 = vrot.slane %v2312_v7, %v1174_v47  ;;  %v1156_v48 = vsel %vm1155_vm3, %v1154_v49, %v1149_v24 }
 0x1d0   : > { %v1262_v59 = vsel %vm1162_vm4, %v1261_v20, %v1257_v17 }
 0x1d1   : > { %v2316_v25 = vpop.xlane.xlu1 %1043  ;;  %v2318_v22 = vpop.xlane.xlu0 %1071 }
 0x1d2   : > { %v1266_v60 = vrot.slane %v2318_v22, %v1167_v33  ;;  %v1182_v36 = vrot.slane %v2316_v25, %v1181_v15  ;;  %v1163_v22 = vsel %vm1162_vm4, %v1161_v58, %v1156_v48 }
 0x1d4   : > { %v1267_v16 = vsel %vm1169_vm5, %v1266_v60, %v1262_v59 }
 0x1d5   : > { %v2320_v18 = vpop.xlane.xlu1 %1045  ;;  %v2322_v44 = vpop.xlane.xlu0 %1073 }
 0x1d6   : > { %v1271_v42 = vrot.slane %v2322_v44, %v1174_v47  ;;  %v1189_v61 = vrot.slane %v2320_v18, %v2347_v13  ;;  %v1170_v44 = vsel %vm1169_vm5, %v1168_v43, %v1163_v22 }
 0x1d8   : > { %v1272_v35 = vsel %vm1176_vm6, %v1271_v42, %v1267_v16 }
 0x1d9   : > { %v2325_v1 = vpop.xlane.xlu1 %1047  ;;  %v2327_v62 = vpop.xlane.xlu0 %1075 }
 0x1da   : > { %v1276_v27 = vrot.slane %v2327_v62, %v1181_v15  ;;  %v1196_v54 = vrot.slane %v2325_v1, %v1195_v14  ;;  %v1177_v62 = vsel %vm1176_vm6, %v1175_v29, %v1170_v44 }
 0x1db   : > { %v1184_v18 = vsel %vm1183_vm7, %v1182_v36, %v1177_v62 }
 0x1dd   : > { %v2329_v63 = vpop.xlane.xlu1 %1049  ;;  %v2331_v34 = vpop.xlane.xlu0 %1077 }
 0x1de   : > { %v1281_v7 = vrot.slane %v2331_v34, %v2347_v13  ;;  %v1203_v32 = vrot.slane %v2329_v63, %v1202_v5  ;;  %v1277_v34 = vsel %vm1183_vm7, %v1276_v27, %v1272_v35 }
 0x1e0   : > { %v1282_v47 = vsel %vm1190_vm8, %v1281_v7, %v1277_v34 }
 0x1e1   : > { %v2336_v4 = vpop.xlane.xlu1 %1051  ;;  %v2338_v26 = vpop.xlane.xlu0 %1079 }
 0x1e2   : > { %v1286_v25 = vrot.slane %v2338_v26, %v1195_v14  ;;  %v1210_v46 = vrot.slane %v2336_v4, %v2361_v30  ;;  %v1191_v26 = vsel %vm1190_vm8, %v1189_v61, %v1184_v18 }
 0x1e3   : > { %v1198_v15 = vsel %vm1197_vm9, %v1196_v54, %v1191_v26 }
 0x1e4   : > { %v1287_v13 = vsel %vm1197_vm9, %v1286_v25, %v1282_v47  ;;  %v1205_v21 = vsel %vm1204_vm10, %v1203_v32, %v1198_v15 }
 0x1e5   : > { %v2349_v12 = vpop.xlane.xlu1 %1053  ;;  %v2351_v23 = vpop.xlane.xlu0 %1081  ;;  %v1212_v2 = vsel %vm1211_vm11, %v1210_v46, %v1205_v21 }
 0x1e6   : > { %v1291_v9 = vrot.slane %v2351_v23, %v1202_v5  ;;  %v1217_v63 = vrot.slane %v2349_v12, %v2367_v51 }
 0x1e8   : > { %v1292_v55 = vsel %vm1204_vm10, %v1291_v9, %v1287_v13  ;;  %v1219_v14 = vsel %vm1218_vm12, %v1217_v63, %v1212_v2 }
 0x1e9   : > { %v1084_v3 = vpop.xlane.xlu0 %1083  ;;  %v1056_v10 = vpop.xlane.xlu1 %1055 }
 0x1ea   : > { %v1296_v0 = vrot.slane %v1084_v3, %v2361_v30  ;;  %v1224_v23 = vrot.slane %v1056_v10, %v2372_v31 }
 0x1ec   : > { %v1297_v12 = vsel %vm1211_vm11, %v1296_v0, %v1292_v55  ;;  %v1226_v5 = vsel %vm1225_vm13, %v1224_v23, %v1219_v14 }
 0x1ed   : > { %v1086_v41 = vpop.xlane.xlu0 %1085  ;;  %v1058_v1 = vpop.xlane.xlu1 %1057 }
 0x1ee   : > { %v1301_v37 = vrot.slane %v1086_v41, %v2367_v51  ;;  %v1231_v40 = vrot.slane %v1058_v1, %v2375_v56 }
 0x1f0   : > { %v1302_v19 = vsel %vm1218_vm12, %v1301_v37, %v1297_v12  ;;  %v1233_v50 = vsel %vm1232_vm14, %v1231_v40, %v1226_v5 }
 0x1f1   : > { %v1088_v33 = vpop.xlane.xlu0 %1087 }
 0x1f2   : > { %v1306_v4 = vrot.slane %v1088_v33, %v2372_v31 }
 0x1f4   : > { %v1307_v30 = vsel %vm1225_vm13, %v1306_v4, %v1302_v19 }
 0x1f5   : > { %v1090_v28 = vpop.xlane.xlu0 %1089 }
 0x1f6   : > { %v1311_v45 = vrot.slane %v1090_v28, %v2375_v56  ;;  %1321 = sbr.rel (%p1400_p10) target bundleno = 519 (0x207), region = 74 }
 0x1f8   : > { %v1312_v8 = vsel %vm1232_vm14, %v1311_v45, %v1307_v30 }
 0x1f9   : > { %v1314_v51 = vsel %vm1313_vm15, %v1312_v8, %v1233_v50 }
 0x1fa   : > { %v1316_v49 = vadd.f32 %v1314_v51, %v1026_v52 }
 0x1fc   : > { %1317 = vst [vmem:[#allocation2] sm:$0x3] %v1316_v49 }
 0x203   : > { %v1322_v6 = vld [vmem:[#allocation2] sm:$0x3] }
 0x204   : > { %v1323_v31 = vmul.f32 0.00390625, %v1322_v6 }
 0x206   : > { %1324 = vst [vmem:[#allocation4] sm:$0x3] %v1323_v31 }
 0x207 PF: > { %p2432_p11 = scmp.eq.s32.totalorder %s1392_s17, 1  ;;  %s1528_s4 = smov [#allocation4]  }
 0x208   : > { %s1334_s28 = sshll.u32 %s1528_s4, 4  ;;  %s1335_s28 = int_to_ptr.vmem [resolvable:$true] %s1334_s28 }
 0x209   : > { %s1456_s29 = scalar_lea.vmem %s1335_s28, 32  ;;  %p1463_p1 = scmp.lt.s32.totalorder %s1335_s28, %s1335_s28 }
 0x20a   : > { %p1457_p12 = scmp.ne.s32.totalorder %s1335_s28, %s1456_s29  ;;  %p1464_p2 = scmp.lt.s32.totalorder %s1456_s29, %s1456_s29 }
 0x20c   : > { %p1458_p13 = pnand %p1457_p12, %p2432_p11  ;;  %p1465_p3 = por %p1464_p2, %p1463_p1 }
 0x20e   : > { %p1459_p0 = pneg %p1458_p13 }
 0x210   : > { %p1466_p4 = pnand %p1465_p3, %p1459_p0 }
 0x212   : > { %1469 = shalt.err (!%p1466_p4)
}
 0x213   : > { %s1470_s17 = scalar_lea.hbm %s2476_s3, 32 }
 0x214   : > { %p1471_p5 = scmp.ne.s32.totalorder %s2476_s3, %s1470_s17  ;;  %p1476_p8 = scmp.lt.u32.totalorder %s1470_s17, %s2476_s3 }
 0x216   : > { %p1472_p6 = pnand %p1471_p5, %p2432_p11 }
 0x218   : > { %p1473_p7 = pneg %p1472_p6 }
 0x21a   : > { %p1478_p9 = pnand %p1476_p8, %p1473_p7 }
 0x21c   : > { %1481 = shalt.err (!%p1478_p9)
}
 0x21d   : > { %1406 = dma.vmem_to_hbm [thread:$0]  (%p2432_p11), %s1335_s28, 32, %s2476_s3, [#allocation5]  }
 0x21e   : > { %1503 = dma.done.wait (%p2432_p11), [#allocation5], 32  }
 0x21f   : > { %1505 = vsyncadd (%p2432_p11), [#allocation5], 4294967264 }
 0x220 PF: > { %s14_s16 = sadd.s32 1, %s1524_s16   ;;  %s2537_s12 = smov %s1512_s13 }
 0x221   : > { %p11_p10 = scmp.ge.s32.totalorder %s14_s16, 4   ;;  %s2538_s13 = smov %s1585_s21 }
 0x222   : > { %s2539_s14 = smov %s1520_s15  ;;  %s2540_s15 = smov %s2542_s18 }
 0x223   :  { %13 = sbr.rel (!%p11_p10) target bundleno = 3 (0x3), region = 107 }
 0x22a   :  { %1347 = vsyncpa [#allocation5], 1 }
 0x22b   :  { %1349 = vsyncpa [#allocation5 + $0x1], 1 }

</bundles_post_ra>
